<compile_context>
chip_gen: v7x
topology: tpu7x:2x2x1
jax: 0.10.0
libtpu: 0.0.40
codegen_flags: <defaults>
</compile_context>

<pallas_src>
import math
import jax
import jax.numpy as jnp
from jax.experimental import pallas as pl
from jax.experimental.pallas import tpu as pltpu

BN_EPS = 1e-5
# Blocks below are a few MiB per grid step; 32 MiB scoped VMEM is safe on v5e/v6e
# (128 MiB physical) and on v7x (64 MiB physical).
VMEM_LIMIT_BYTES = 32 * 1024 * 1024


def _round_up(x, m):
    return ((x + m - 1) // m) * m


def _silu(y):
    # y * sigmoid(y); exp and the approx reciprocal both go to the EUP slot.
    return y * pl.reciprocal(1.0 + jnp.exp(-y), approx=True)


# --------------------- 1x1 conv: pointwise channel matmul (NCHW) ---------------------

def _conv1x1_kernel(x_ref, w_ref, s_ref, b_ref, o_ref):
    # (Cout, Cin) @ (Cin, THW) -> (Cout, THW): output is already channel-major (NCHW).
    y = jnp.dot(w_ref[...], x_ref[0], preferred_element_type=jnp.float32)
    y = y * s_ref[...] + b_ref[...]
    o_ref[0] = _silu(y).astype(o_ref.dtype)


def _conv1x1(x_nchw, w_oihw, scale, bias):
    N, Cin, H, W = x_nchw.shape
    Cout = w_oihw.shape[0]
    HW = H * W

    # Large lane-dense spatial tile that divides HW exactly (no pad copy).
    THW = HW
    if HW % 128 == 0:
        for cand in (1024, 512, 256, 128):
            if HW % cand == 0:
                THW = cand
                break
    # TODO(synk): for very large HW not divisible by 128, tile with a lane-pad copy
    # instead of one full-HW block.

    x2 = x_nchw.reshape(N, Cin, HW)            # pure view: no transpose, no pad
    w = w_oihw[:, :, 0, 0]                     # (Cout, Cin)
    s = scale.reshape(Cout, 1)
    b = bias.reshape(Cout, 1)

    out = pl.pallas_call(
        _conv1x1_kernel,
        out_shape=jax.ShapeDtypeStruct((N, Cout, HW), x_nchw.dtype),
        grid=(N, HW // THW),
        in_specs=[
            pl.BlockSpec((1, Cin, THW), lambda n, t: (n, 0, t)),
            pl.BlockSpec((Cout, Cin), lambda n, t: (0, 0)),
            pl.BlockSpec((Cout, 1), lambda n, t: (0, 0)),
            pl.BlockSpec((Cout, 1), lambda n, t: (0, 0)),
        ],
        out_specs=pl.BlockSpec((1, Cout, THW), lambda n, t: (n, 0, t)),
        compiler_params=pltpu.CompilerParams(
            dimension_semantics=("parallel", "parallel"),
            vmem_limit_bytes=VMEM_LIMIT_BYTES),
    )(x2, w, s, b)
    return out.reshape(N, Cout, H, W)


# --------------------- k x k conv (odd k, stride 1): row-strip tiled ------------------

def _make_convkxk_kernel(TH, THC, Wpp, k, TCo):
    """One grid step = one row strip (TH image rows) x one Cout tile (TCo lanes).

    The input ref holds the strip of the zero-padded image flattened to
    (1, 1, (TH+2P+1)*Wpp, Cin) with row stride Wpp (multiple of 8 sublanes).  Each tap
    (ky, kx) is a contiguous flat window read at offset ky*Wpp + kx feeding one matmul.
    The output block is stored fully dense ((TH*Wpp, TCo)); the padded columns c in
    [W, Wpp) and padded Cout lanes are stripped in the wrapper.  The one extra bottom
    pad row of the strip covers the flat overread seen only by discarded columns.
    """
    TMC = THC * Wpp                 # flat rows per inner chunk (accumulator height)
    n_chunks = TH // THC

    def kernel(xs_ref, w_ref, s_ref, b_ref, o_ref):
        scale = s_ref[...]          # (1, TCo)
        bias = b_ref[...]
        for c in range(n_chunks):                       # static unroll
            r0 = c * TMC
            acc = jnp.zeros((TMC, TCo), jnp.float32)    # small, register/VMEM friendly
            for ky in range(k):
                for kx in range(k):
                    d = r0 + ky * Wpp + kx
                    slab = xs_ref[0, 0, pl.ds(d, TMC), :]         # contiguous window
                    acc = acc + jnp.dot(slab, w_ref[ky, kx],
                                        preferred_element_type=jnp.float32)
            y = acc * scale + bias
            o_ref[0, 0, pl.ds(r0, TMC), :] = _silu(y).astype(o_ref.dtype)

    return kernel


def _convkxk(x_nchw, w_oihw, scale, bias):
    N, Cin, H, W = x_nchw.shape
    Cout, _, k, _ = w_oihw.shape
    P = k // 2

    Wpp = _round_up(W + 2 * P, 8)                  # padded row stride (sublane aligned)
    Cout_p = _round_up(Cout, 128)                  # lane-dense output channels
    TCo = min(Cout_p, 128)                         # Cout tile (Cout_p % TCo == 0)

    # Strip height: ~1024 flat rows per strip, but keep >=2 strips when H allows.
    TH = min(max(1, 1024 // Wpp), max(1, (H + 1) // 2))
    Hp = _round_up(H, TH)
    n_s = Hp // TH
    # Inner accumulator chunk: ~128 flat rows of the strip, divisor of TH image rows.
    THC = max(1, min(TH, 128 // Wpp)) if Wpp <= 128 else 1
    while TH % THC:
        THC -= 1
    SR = TH + 2 * P + 1                            # strip rows incl. halo + overread row

    # NHWC inside the kernel (channels on lanes).  Zero halo: P rows top,
    # (Hp-H)+P+1 rows bottom, P cols left, rest on the right.
    x = jnp.transpose(x_nchw, (0, 2, 3, 1))
    xp = jnp.pad(x, ((0, 0), (P, Hp - H + P + 1), (P, Wpp - W - P), (0, 0)))

    # Overlapping row strips (halo carried explicitly; standard blocked BlockSpecs).
    x_strips = jnp.stack([xp[:, s * TH: s * TH + SR] for s in range(n_s)], axis=1)
    x_strips = x_strips.reshape(N, n_s, SR * Wpp, Cin)

    w_t = jnp.transpose(w_oihw, (2, 3, 1, 0))                       # (k, k, Cin, Cout)
    w_t = jnp.pad(w_t, ((0, 0), (0, 0), (0, 0), (0, Cout_p - Cout)))
    s_p = jnp.pad(scale.reshape(1, Cout), ((0, 0), (0, Cout_p - Cout)))
    b_p = jnp.pad(bias.reshape(1, Cout), ((0, 0), (0, Cout_p - Cout)))

    kernel = _make_convkxk_kernel(TH, THC, Wpp, k, TCo)
    out = pl.pallas_call(
        kernel,
        out_shape=jax.ShapeDtypeStruct((N, n_s, TH * Wpp, Cout_p), x.dtype),
        grid=(N, n_s, Cout_p // TCo),
        in_specs=[
            pl.BlockSpec((1, 1, SR * Wpp, Cin), lambda n, s, c: (n, s, 0, 0)),
            pl.BlockSpec((k, k, Cin, TCo), lambda n, s, c: (0, 0, 0, c)),
            pl.BlockSpec((1, TCo), lambda n, s, c: (0, c)),
            pl.BlockSpec((1, TCo), lambda n, s, c: (0, c)),
        ],
        out_specs=pl.BlockSpec((1, 1, TH * Wpp, TCo), lambda n, s, c: (n, s, 0, c)),
        compiler_params=pltpu.CompilerParams(
            dimension_semantics=("parallel", "parallel", "parallel"),
            vmem_limit_bytes=VMEM_LIMIT_BYTES),
    )(x_strips, w_t, s_p, b_p)

    # Strip padded rows/cols/channels where it fuses with the NHWC->NCHW transpose.
    out = out.reshape(N, Hp, Wpp, Cout_p)[:, :H, :W, :Cout]
    return jnp.transpose(out, (0, 3, 1, 2))


# ------------------------------------ public entry ------------------------------------

def conv_bn_silu(x_nchw, w_oihw, gamma, beta, mean, var, *,
                 stride=1, groups=1, eps=BN_EPS):
    """Fused Conv2d(pad=k//2, bias=False) -> BatchNorm2d(eval) -> SiLU.  NCHW in/out."""
    N, Cin, H, W = x_nchw.shape
    Cout, Cin_w, kh, kw = w_oihw.shape
    if kh != kw or kh % 2 == 0 or stride != 1 or groups != 1 or Cin_w != Cin:
        # TODO(synk): even k, stride > 1 and grouped conv have no Pallas path here.
        raise NotImplementedError("only odd k, stride=1, groups=1 supported")

    scale = (gamma / jnp.sqrt(var + eps)).astype(jnp.float32)
    bias = (beta - mean * scale).astype(jnp.float32)

    if kh == 1:
        return _conv1x1(x_nchw, w_oihw, scale, bias)
    return _convkxk(x_nchw, w_oihw, scale, bias)


def _fold_bn(gamma, beta, mean, var, eps=BN_EPS):
    s = gamma / jnp.sqrt(var + eps)
    return s, beta - mean * s


def reference_forward(x, w_oihw, gamma, beta, mean, var, eps=BN_EPS):
    """Plain-JAX/XLA reference of Conv.forward (eval-mode BN), HIGHEST precision."""
    y = jax.lax.conv_general_dilated(
        x, w_oihw, (1, 1), "SAME",
        dimension_numbers=("NCHW", "OIHW", "NCHW"),
        precision=jax.lax.Precision.HIGHEST)
    s, b = _fold_bn(gamma, beta, mean, var, eps)
    y = y * s.reshape(1, -1, 1, 1) + b.reshape(1, -1, 1, 1)
    return y * jax.nn.sigmoid(y)


if __name__ == "__main__":
    N, C1, C2, H, W = 2, 4, 8, 16, 16
    key = jax.random.PRNGKey(0)
    ks = jax.random.split(key, 8)

    x = jax.random.normal(ks[0], (N, C1, H, W), jnp.float32)

    # BatchNorm2d parameters / running stats (inference fold).
    gamma = 1.0 + 0.1 * jax.random.normal(ks[1], (C2,), jnp.float32)
    beta = 0.1 * jax.random.normal(ks[2], (C2,), jnp.float32)
    mean = 0.1 * jax.random.normal(ks[3], (C2,), jnp.float32)
    var = jax.random.uniform(ks[4], (C2,), jnp.float32, 0.5, 1.5)

    # Test both the module default (k=1) and the common 3x3 configuration.
    for i, k in enumerate((1, 3)):
        w = jax.random.normal(ks[5 + i], (C2, C1, k, k), jnp.float32) / math.sqrt(C1 * k * k)

        out = jax.block_until_ready(conv_bn_silu(x, w, gamma, beta, mean, var))
        ref = jax.block_until_ready(reference_forward(x, w, gamma, beta, mean, var))

        assert out.shape == (N, C2, H, W) and out.dtype == jnp.float32
        max_err = float(jnp.max(jnp.abs(out - ref)))
        # Kernel uses default (single-pass) MXU precision + approx reciprocal in SiLU
        # vs. a HIGHEST-precision reference, hence the slightly loose tolerance.
        assert jnp.allclose(out, ref, rtol=3e-2, atol=3e-2), (k, max_err)

    print("KERNEL_OK")
</pallas_src>

<mosaic_0001>
module attributes {stable_mosaic.version = 11 : i64} {
  func.func @_conv1x1_kernel(%arg0: i32, %arg1: i32, %arg2: memref<1x4x256xf32, #tpu.memory_space<vmem>>, %arg3: memref<8x4xf32, #tpu.memory_space<vmem>>, %arg4: memref<8x1xf32, #tpu.memory_space<vmem>>, %arg5: memref<8x1xf32, #tpu.memory_space<vmem>>, %arg6: memref<1x8x256xf32, #tpu.memory_space<vmem>>) attributes {dimension_semantics = [#tpu.dimension_semantics<parallel>, #tpu.dimension_semantics<parallel>], iteration_bounds = array<i64: 2, 1>, scalar_prefetch = 0 : i64, scratch_operands = 0 : i64, tpu.core_type = #tpu.core_type<tc>, window_params = [{transform_indices = @transform_0, window_bounds = array<i64: 1, 4, 256>}, {pipeline_mode = #tpu.pipeline_mode<synchronous>, transform_indices = @transform_1, window_bounds = array<i64: 8, 4>}, {pipeline_mode = #tpu.pipeline_mode<synchronous>, transform_indices = @transform_2, window_bounds = array<i64: 8, 1>}, {pipeline_mode = #tpu.pipeline_mode<synchronous>, transform_indices = @transform_3, window_bounds = array<i64: 8, 1>}, {transform_indices = @transform_4, window_bounds = array<i64: 1, 8, 256>}]} {
    %c0 = arith.constant 0 : index
    %c0_0 = arith.constant 0 : index
    %0 = vector.load %arg3[%c0, %c0_0] : memref<8x4xf32, #tpu.memory_space<vmem>>, vector<8x4xf32>
    %c0_1 = arith.constant 0 : index
    %c0_2 = arith.constant 0 : index
    %c0_3 = arith.constant 0 : index
    %1 = vector.load %arg2[%c0_1, %c0_2, %c0_3] : memref<1x4x256xf32, #tpu.memory_space<vmem>>, vector<1x4x256xf32>
    %2 = vector.shape_cast %1 : vector<1x4x256xf32> to vector<4x256xf32>
    %cst = arith.constant dense<0.000000e+00> : vector<8x256xf32>
    %3 = tpu.matmul %0, %2, %cst {dimension_numbers = #tpu.dot_dimension_numbers<[1], [0], [0], [1], [0, 0, 1, 1], [], []>} : vector<8x4xf32>, vector<4x256xf32>, vector<8x256xf32> -> vector<8x256xf32>
    %c0_4 = arith.constant 0 : index
    %c0_5 = arith.constant 0 : index
    %4 = vector.load %arg4[%c0_4, %c0_5] : memref<8x1xf32, #tpu.memory_space<vmem>>, vector<8x1xf32>
    %5 = vector.broadcast %4 : vector<8x1xf32> to vector<8x256xf32>
    %6 = arith.mulf %3, %5 : vector<8x256xf32>
    %c0_6 = arith.constant 0 : index
    %c0_7 = arith.constant 0 : index
    %7 = vector.load %arg5[%c0_6, %c0_7] : memref<8x1xf32, #tpu.memory_space<vmem>>, vector<8x1xf32>
    %8 = vector.broadcast %7 : vector<8x1xf32> to vector<8x256xf32>
    %9 = arith.addf %6, %8 : vector<8x256xf32>
    %cst_8 = arith.constant 0.000000e+00 : f32
    %10 = vector.broadcast %cst_8 : f32 to vector<8x256xf32>
    %11 = arith.subf %10, %9 : vector<8x256xf32>
    %12 = math.exp %11 : vector<8x256xf32>
    %cst_9 = arith.constant 1.000000e+00 : f32
    %13 = vector.broadcast %cst_9 : f32 to vector<8x256xf32>
    %14 = arith.addf %13, %12 : vector<8x256xf32>
    %15 = tpu.reciprocal %14 {approx = true} : vector<8x256xf32> -> vector<8x256xf32>
    %16 = arith.mulf %9, %15 : vector<8x256xf32>
    %c0_10 = arith.constant 0 : index
    %c0_11 = arith.constant 0 : index
    %c0_12 = arith.constant 0 : index
    %17 = vector.load %arg6[%c0_10, %c0_11, %c0_12] : memref<1x8x256xf32, #tpu.memory_space<vmem>>, vector<1x8x256xf32>
    %18 = vector.shape_cast %17 : vector<1x8x256xf32> to vector<8x256xf32>
    %19 = vector.shape_cast %16 : vector<8x256xf32> to vector<1x8x256xf32>
    tpu.vector_store %arg6[%c0_10, %c0_11, %c0_12], %19 {strides = array<i32>} : memref<1x8x256xf32, #tpu.memory_space<vmem>>, vector<1x8x256xf32>,
    return
  }
  func.func @transform_0(%arg0: i32, %arg1: i32) -> (i32, i32, i32) {
    %c0_i32 = arith.constant 0 : i32
    %c0_i32_0 = arith.constant 0 : i32
    return %arg0, %c0_i32, %arg1 : i32, i32, i32
  }
  func.func @transform_1(%arg0: i32, %arg1: i32) -> (i32, i32) {
    %c0_i32 = arith.constant 0 : i32
    %c0_i32_0 = arith.constant 0 : i32
    %c0_i32_1 = arith.constant 0 : i32
    return %c0_i32, %c0_i32_0 : i32, i32
  }
  func.func @transform_2(%arg0: i32, %arg1: i32) -> (i32, i32) {
    %c0_i32 = arith.constant 0 : i32
    %c0_i32_0 = arith.constant 0 : i32
    %c0_i32_1 = arith.constant 0 : i32
    return %c0_i32, %c0_i32_0 : i32, i32
  }
  func.func @transform_3(%arg0: i32, %arg1: i32) -> (i32, i32) {
    %c0_i32 = arith.constant 0 : i32
    %c0_i32_0 = arith.constant 0 : i32
    %c0_i32_1 = arith.constant 0 : i32
    return %c0_i32, %c0_i32_0 : i32, i32
  }
  func.func @transform_4(%arg0: i32, %arg1: i32) -> (i32, i32, i32) {
    %c0_i32 = arith.constant 0 : i32
    %c0_i32_0 = arith.constant 0 : i32
    return %arg0, %c0_i32, %arg1 : i32, i32, i32
  }
}

</mosaic_0001>

<bundles_post_ra>
// kernel: tpu_custom_call.1
= control target key start
LH: loop header
LB: loop body
LE: loop exit
PB: predicated region body
PF: predicated region fallthrough
CT: control target
= control target key end

     0   :  { %9 = vsyncpa [#allocation3], 0  ;;  %s748_s0 = inlined_call_operand.vmem [shape: f32[2,4,256], index: 0, kind: input, shape index: {}]   ;;  %s749_s1 = inlined_call_operand.vmem [shape: f32[8,4], index: 1, kind: input, shape index: {}]   ;;  %s750_s2 = inlined_call_operand.vmem [shape: f32[8,1], index: 2, kind: input, shape index: {}]   ;;  %s751_s3 = inlined_call_operand.vmem [shape: f32[8,1], index: 3, kind: input, shape index: {}]   ;;  %s752_s4 = inlined_call_operand.hbm [shape: f32[2,8,256], index: 4, kind: output, shape index: {}]  }
   0x1   :  { %11 = vsyncpa [#allocation3 + $0x1], 0  ;;  %s627_s15 = smov 0   ;;  %s629_s16 = smov 0  }
   0x2   :  { %s631_s17 = smov 0   ;;  %s633_s18 = smov 0  }
   0x3   :  { %s635_s19 = smov 0   ;;  %s637_s20 = smov 0  }
   0x4 LB: > { %s434_s21 = sadd.s32 4294967295, %s597_s20   ;;  %s435_s22 = sadd.s32 4294967294, %s597_s20   ;;  %s597_s20 = sphi %s637_s20, %s17_s20   ;;  %s593_s19 = sphi %s635_s19, %s759_s19   ;;  %s589_s18 = sphi %s633_s18, %s758_s18   ;;  %s585_s17 = sphi %s631_s17, %s757_s17   ;;  %s581_s16 = sphi %s629_s16, %s756_s16   ;;  %s577_s15 = sphi %s627_s15, %s755_s15  }
   0x5   : > { %s29_s23 = sadd.s32 1, %s593_s19  ;;  %s129_s24 = sadd.s32 1, %s585_s17 }
   0x6   : > { %p31_p0 = scmp.ge.s32.totalorder %s29_s23, 2  ;;  %p139_p1 = scmp.ne.s32.totalorder %s585_s17, %s581_s16 }
   0x7   : > { %p140_p2 = scmp.eq.s32.totalorder %s434_s21, 1  ;;  %p145_p3 = scmp.ne.s32.totalorder %s581_s16, %s577_s15 }
   0x8   : > { %s761_s23 = smov (%p31_p0, %s29_s23), 0  ;;  %p146_p5 = scmp.eq.s32.totalorder %s435_s22, 1 }
   0x9   : > { %p667_p4 = por %p140_p2, %p139_p1  ;;  %s124_s26 = ssub.s32 %s593_s19, %s761_s23 }
   0xa   : > { %p438_p6 = scmp.ge.s32.totalorder %s597_s20, 1  ;;  %p127_p7 = scmp.eq.s32.totalorder %s124_s26, 0 }
   0xb   : > { %p674_p8 = por %p146_p5, %p145_p3  ;;  %p186_p9 = scmp.lt.s32.totalorder %s597_s20, 3 }
   0xc   : > { %s680_s28 = scalar_select %p127_p7, %s585_s17, %s129_s24  }
   0xd   : > { %p187_p10 = pnand %p438_p6, %p186_p9 }
   0xe   : > { %p217_p11 = scmp.lt.s32.totalorder (!%p187_p10), %s589_s18, 1  ;;  %v599_v0 = vmov (!%p187_p10), 0.0   ;;  %v600_v1 = vmov (!%p187_p10), 0   ;;  %v311_v2 = vld [vmem:[%s750_s2] sm:$0xff] (!%p187_p10)  ;;  %vm235_vm0 = vcmask (!%p187_p10), 1043456   ;;  %vm231_vm1 = vcmask (!%p187_p10), 31744  }
   0xf   : > { %190 = sbr.rel (%p187_p10) target bundleno = 292 (0x124), region = 36  ;;  %304 = vmatprep.mubr.f32.mxu0 (!%p187_p10), %v599_v0  ;;  %509 = vset.pattern.permute.xlu0 (!%p187_p10), %v600_v1  ;;  %v319_v3 = vld [vmem:[%s751_s3] sm:$0xff] (!%p187_p10)  ;;  %s213_s14 = sand.u32 (!%p187_p10), 1, %s581_s16  }
  0x10   : > { %314 = vperm.xlu0 (!%p187_p10), %509, %v311_v2   ;;  %v227_v6 = vld [vmem:[%s749_s1] sm:$0xff] (!%p187_p10)  ;;  %s439_s21 = sshll.u32 (!%p187_p10), %s213_s14, 4  ;;  %s451_s22 = sshll.u32 (!%p187_p10), %s589_s18, 8 }
  0x11   : > { %s215_s24 = scalar_lea.vmem (!%p187_p10), [#allocation2], %s439_s21  ;;  %s342_s6 = scalar_lea.sflag (!%p187_p10), [#allocation3], %s213_s14 }
  0x12   : > { %s358_s26 = sshll.u32 (!%p187_p10), %s215_s24, 4  ;;  %s601_s7 = smov (!%p187_p10), [#allocation2]   ;;  %s703_s26 = int_to_ptr.vmem [resolvable:$true] %s358_s26 }
  0x14   : > { %322 = vperm.xlu0 (!%p187_p10), %509, %v319_v3  }
  0x16   : > { %s218_s5 = scalar_select %p217_p11, %s589_s18, 1 }
  0x17   : > { %s519_s18 = scalar_lea.vmem %s703_s26, 256 }
  0x18   : > { %s450_s8 = sshll.u32 %s218_s5, 3  ;;  %s701_s5 = scalar_lea.hbm %s752_s4, %s451_s22 }
  0x19   : > { %s224_s11 = scalar_lea.vmem %s748_s0, %s450_s8  ;;  %p520_p12 = scmp.ne.s32.totalorder %s703_s26, %s519_s18 }
  0x1a   : > { %v228_v4 = vld [vmem:[%s224_s11] sm:$0xff]  ;;  %s523_s8 = sshll.u32 %s601_s7, 4  ;;  %s524_s8 = int_to_ptr.vmem [resolvable:$false] %s523_s8 }
  0x1b   : > { %v230_v5 = vcombine.high %v228_v4, %v228_v4  ;;  %p521_p13 = pnand %p520_p12, %p667_p4  ;;  %s525_s9 = scalar_lea.vmem %s524_s8, 512 }
  0x1c   : > { %p526_p1 = scmp.lt.s32.totalorder %s703_s26, %s524_s8  ;;  %p527_p2 = scmp.lt.s32.totalorder %s525_s9, %s519_s18 }
  0x1d   : > { %442 = vmatprep.subr.msk.mxu0 %vm235_vm0, %v230_v5  ;;  %p522_p0 = pneg %p521_p13 }
  0x1e   : > { %443 = vmatpush1.msk.msra.mxu0 %vm235_vm0, %v228_v4  ;;  %p528_p3 = por %p527_p2, %p526_p1 }
  0x1f   : > { %444 = vmatmul.mubr.msk.f32.vlgmr.msra.gmra.mrb[0].mxu0 %vm231_vm1, %v227_v6 }
  0x20   : > { %p529_p5 = pnand %p528_p3, %p522_p0 }
  0x8f   : > { %v315_v7 = vpop.permute.xlu0 %314 }
  0x93   : > { %v323_v11 = vpop.permute.xlu0 %322 }
  0xf2   : > { %v306_v8 = vpop.f32.mrb[0].mxu0 }
  0xf3   : > { %v317_v9 = vmul.f32 %v315_v7, %v306_v8  ;;  %v308_v10 = vpop.f32.mrb[1].mxu0 }
  0xf4   : > { %v318_v12 = vmul.f32 %v315_v7, %v308_v10 }
  0xf5   : > { %v325_v13 = vadd.f32 %v323_v11, %v317_v9 }
  0xf6   : > { %v326_v14 = vadd.f32 %v323_v11, %v318_v12 }
  0xf7   : > { %v327_v15 = vsub.f32 0.0, %v325_v13 }
  0xf8   : > { %v328_v16 = vsub.f32 0.0, %v326_v14 }
  0xf9   : > { %v329_v17 = vmul.f32 1.442695, %v327_v15 }
  0xfa   : > { %v331_v18 = vmul.f32 1.442695, %v328_v16 }
  0xfb   : > { %511 = vpow2.f32 %v329_v17 }
  0xfc   : > { %513 = vpow2.f32 %v331_v18 }
 0x105   : > { %v512_v19 = vpop.eup %511 }
 0x106   : > { %v514_v20 = vpop.eup %513  ;;  %v333_v21 = vadd.f32 1.0, %v512_v19 }
 0x107   : > { %v334_v22 = vadd.f32 1.0, %v514_v20 }
 0x108   : > { %515 = vrcp.f32 %v333_v21 }
 0x109   : > { %517 = vrcp.f32 %v334_v22 }
 0x112   : > { %v516_v23 = vpop.eup %515 }
 0x113   : > { %v518_v24 = vpop.eup %517  ;;  %v337_v25 = vmul.f32 %v516_v23, %v325_v13 }
 0x114   : > { %v338_v26 = vmul.f32 %v518_v24, %v326_v14 }
 0x115   : > { %339 = vst [vmem:[%s215_s24] sm:$0xff] %v337_v25 }
 0x116   : > { %340 = vst [vmem:[%s215_s24 + $0x8] sm:$0xff] %v338_v26 }
 0x117   : > { %532 = shalt.err (!%p529_p5)
}
 0x118   : > { %s533_s10 = scalar_lea.hbm %s701_s5, 256  ;;  %s537_s13 = scalar_lea.hbm %s752_s4, 512 }
 0x119   : > { %p534_p6 = scmp.ne.s32.totalorder %s701_s5, %s533_s10  ;;  %p538_p10 = scmp.lt.u32.totalorder %s701_s5, %s752_s4 }
 0x11a   : > { %p539_p11 = scmp.lt.u32.totalorder %s537_s13, %s533_s10  ;;  %p541_p13 = scmp.lt.u32.totalorder %s533_s10, %s701_s5 }
 0x11b   : > { %p535_p7 = pnand %p534_p6, %p667_p4 }
 0x11c   : > { %p540_p12 = por %p539_p11, %p538_p10 }
 0x11d   : > { %p536_p9 = pneg %p535_p7 }
 0x11e   : > { %p542_p0 = por %p541_p13, %p540_p12 }
 0x120   : > { %p543_p1 = pnand %p542_p0, %p536_p9 }
 0x122   : > { %546 = shalt.err (!%p543_p1)
}
 0x123   : > { %452 = dma.vmem_to_hbm [thread:$0]  (%p667_p4), %s703_s26, 256, %s701_s5, %s342_s6  }
 0x124 PF: > { %p458_p2 = scmp.ge.s32.totalorder %s597_s20, 2  ;;  %s370_s22 = sand.u32 1, %s577_s15  }
 0x125   : > { %s371_s24 = scalar_lea.sflag [#allocation3], %s370_s22 }
 0x126   : > { %p455_p3 = pnand %p458_p2, %p674_p8 }
 0x128   : > { %572 = dma.done.wait (!%p455_p3), %s371_s24, 256  }
 0x129   : > { %574 = vsyncadd (!%p455_p3), %s371_s24, 4294967040  ;;  %s17_s20 = sadd.s32 1, %s597_s20   ;;  %s755_s15 = smov %s581_s16 }
 0x12a   : > { %p14_p5 = scmp.ge.s32.totalorder %s17_s20, 4   ;;  %s756_s16 = smov %s585_s17 }
 0x12b   : > { %s757_s17 = smov %s680_s28  ;;  %s758_s18 = smov %s593_s19 }
 0x12c   : > { %s759_s19 = smov %s761_s23  ;;  %16 = sbr.rel (!%p14_p5) target bundleno = 4 (0x4), region = 71 }
 0x133   :  { %376 = vsyncpa [#allocation3], 1 }
 0x134   :  { %378 = vsyncpa [#allocation3 + $0x1], 1 }

</bundles_post_ra>
